<compile_context>
chip_gen: v7x
topology: tpu7x:2x2x1
jax: 0.10.0
libtpu: 0.0.40
codegen_flags: <defaults>
</compile_context>

<pallas_src>
import jax
import jax.numpy as jnp
from jax.experimental import pallas as pl
from jax.experimental.pallas import tpu as pltpu

H1, H2 = 400, 300          # logical hidden widths (PyTorch Actor)
H1_P, H2_P = 512, 384      # lane-aligned padded widths (multiples of 128)
LANE = 128
SUBLANE = 8
OBS_ALIGN = 16             # bf16 sublane packing for the obs feature dim
MAX_TB = 512               # max batch tile (amortizes per-grid-step overhead)


def _round_up(x, m):
    return ((x + m - 1) // m) * m


def actor_kernel(obs_ref, w1_ref, b1_ref, w2_ref, b2_ref, w3_ref, tail_ref,
                 out_ref):
    # Layer 1: Linear(obs_dim, 400) + ReLU.  obs already bf16; f32 accumulate.
    h1 = jnp.dot(obs_ref[...], w1_ref[...], preferred_element_type=jnp.float32)
    h1 = jnp.maximum(h1 + b1_ref[...], 0.0)
    # Layer 2: Linear(400, 300) + ReLU.
    h2 = jnp.dot(h1.astype(jnp.bfloat16), w2_ref[...],
                 preferred_element_type=jnp.float32)
    h2 = jnp.maximum(h2 + b2_ref[...], 0.0)
    # Output layer: Linear(300, act_dim) + tanh, fused action rescale.
    a = jnp.dot(h2.astype(jnp.bfloat16), w3_ref[...],
                preferred_element_type=jnp.float32)
    a = jnp.tanh(a + tail_ref[0:1, :])                       # + b3
    out_ref[...] = a * tail_ref[1:2, :] + tail_ref[2:3, :]   # * scale + bias


def _choose_tiles(B):
    """Balanced batch tiling: even #steps (>=2) when B>8 so both v7x TCs work."""
    n = pl.cdiv(B, MAX_TB)
    if B > SUBLANE:
        n = max(n, 2)
        n += n % 2
    tb = _round_up(pl.cdiv(B, n), SUBLANE)
    grid = pl.cdiv(B, tb)
    return tb, grid


def actor_forward(obs, pp, act_dim):
    """obs: (B, obs_dim) f32.  pp: padded params (weights bf16, rest f32)."""
    B, obs_dim = obs.shape
    obs_p = pp["w1"].shape[0]      # obs_dim rounded to OBS_ALIGN (not 128)
    act_p = pp["w3"].shape[1]

    TB, grid = _choose_tiles(B)
    Bp = TB * grid

    # Stream obs as bf16 — halves the per-step input DMA, removes in-kernel cast.
    obs_pad = jnp.zeros((Bp, obs_p), jnp.bfloat16)
    obs_pad = obs_pad.at[:B, :obs_dim].set(obs.astype(jnp.bfloat16))

    flops = 2 * Bp * (obs_p * H1_P + H1_P * H2_P + H2_P * act_p)
    bytes_accessed = (obs_pad.size * 2
                      + pp["w1"].size * 2 + pp["w2"].size * 2 + pp["w3"].size * 2
                      + (pp["b1"].size + pp["b2"].size + pp["tail"].size) * 4
                      + Bp * act_p * 4)

    out = pl.pallas_call(
        actor_kernel,
        out_shape=jax.ShapeDtypeStruct((Bp, act_p), jnp.float32),
        grid=(grid,),
        in_specs=[
            # obs tile streams over the batch grid.
            pl.BlockSpec((TB, obs_p), lambda i: (i, 0)),
            # Weights / biases: constant block index -> DMA'd once, VMEM-resident.
            pl.BlockSpec((obs_p, H1_P), lambda i: (0, 0)),
            pl.BlockSpec((1, H1_P), lambda i: (0, 0)),
            pl.BlockSpec((H1_P, H2_P), lambda i: (0, 0)),
            pl.BlockSpec((1, H2_P), lambda i: (0, 0)),
            pl.BlockSpec((H2_P, act_p), lambda i: (0, 0)),
            pl.BlockSpec((3, act_p), lambda i: (0, 0)),
        ],
        out_specs=pl.BlockSpec((TB, act_p), lambda i: (i, 0)),
        compiler_params=pltpu.CompilerParams(
            dimension_semantics=("parallel",)),
        cost_estimate=pl.CostEstimate(
            flops=flops,
            transcendentals=Bp * act_p,
            bytes_accessed=bytes_accessed),
    )(obs_pad,
      pp["w1"], pp["b1"], pp["w2"], pp["b2"], pp["w3"], pp["tail"])

    return out[:B, :act_dim]


def init_params(key, obs_dim, act_dim, action_low, action_high):
    """PyTorch-Linear-style init (uniform +-1/sqrt(fan_in)), logical shapes, f32."""
    def linear(key, fan_in, fan_out):
        kw, kb = jax.random.split(key)
        bound = 1.0 / jnp.sqrt(float(fan_in))
        w = jax.random.uniform(kw, (fan_in, fan_out), jnp.float32, -bound, bound)
        b = jax.random.uniform(kb, (1, fan_out), jnp.float32, -bound, bound)
        return w, b

    k1, k2, k3 = jax.random.split(key, 3)
    w1, b1 = linear(k1, obs_dim, H1)
    w2, b2 = linear(k2, H1, H2)
    w3, b3 = linear(k3, H2, act_dim)
    scale = ((action_high - action_low) / 2.0).reshape(1, act_dim).astype(jnp.float32)
    action_bias = ((action_high + action_low) / 2.0).reshape(1, act_dim).astype(jnp.float32)
    return dict(w1=w1, b1=b1, w2=w2, b2=b2, w3=w3, b3=b3,
                scale=scale, action_bias=action_bias)


def pad_params(p, obs_dim, act_dim):
    """Zero-pad to aligned shapes; weights -> bf16, biases/scale stay f32.

    obs feature dim is padded only to a multiple of 16 (bf16 sublane packing),
    hidden dims to multiples of 128 lanes, act dim to 128 lanes.  b3 / scale /
    action_bias are stacked into a single (3, act_p) "tail" array.
    """
    obs_p = _round_up(max(obs_dim, 1), OBS_ALIGN)
    act_p = _round_up(max(act_dim, 1), LANE)

    def pad2(a, r, c, dtype):
        out = jnp.zeros((r, c), jnp.float32).at[:a.shape[0], :a.shape[1]].set(a)
        return out.astype(dtype)

    tail = jnp.concatenate([
        pad2(p["b3"], 1, act_p, jnp.float32),
        pad2(p["scale"], 1, act_p, jnp.float32),
        pad2(p["action_bias"], 1, act_p, jnp.float32),
    ], axis=0)

    return dict(
        w1=pad2(p["w1"], obs_p, H1_P, jnp.bfloat16),
        b1=pad2(p["b1"], 1, H1_P, jnp.float32),
        w2=pad2(p["w2"], H1_P, H2_P, jnp.bfloat16),
        b2=pad2(p["b2"], 1, H2_P, jnp.float32),
        w3=pad2(p["w3"], H2_P, act_p, jnp.bfloat16),
        tail=tail,
    )


def actor_ref_f32(obs, p):
    """Pure f32 reference (matches the PyTorch module exactly)."""
    h1 = jnp.maximum(obs @ p["w1"] + p["b1"], 0.0)
    h2 = jnp.maximum(h1 @ p["w2"] + p["b2"], 0.0)
    a = jnp.tanh(h2 @ p["w3"] + p["b3"])
    return a * p["scale"] + p["action_bias"]


def actor_ref_bf16(obs, p):
    """Reference that applies the same bf16 quantization points as the kernel."""
    def mm(x, w):
        return jnp.dot(x.astype(jnp.bfloat16), w.astype(jnp.bfloat16),
                       preferred_element_type=jnp.float32)
    h1 = jnp.maximum(mm(obs, p["w1"]) + p["b1"], 0.0)
    h2 = jnp.maximum(mm(h1, p["w2"]) + p["b2"], 0.0)
    a = jnp.tanh(mm(h2, p["w3"]) + p["b3"])
    return a * p["scale"] + p["action_bias"]


if __name__ == "__main__":
    key = jax.random.PRNGKey(0)
    k_obs, k_params = jax.random.split(key)

    B, OBS_DIM, ACT_DIM = 2, 16, 4
    action_low = jnp.full((ACT_DIM,), -2.0, jnp.float32)
    action_high = jnp.full((ACT_DIM,), 2.0, jnp.float32)

    obs = jax.random.normal(k_obs, (B, OBS_DIM), jnp.float32)
    params = init_params(k_params, OBS_DIM, ACT_DIM, action_low, action_high)
    padded = pad_params(params, OBS_DIM, ACT_DIM)

    out = actor_forward(obs, padded, ACT_DIM)
    out = jax.block_until_ready(out)
    assert out.shape == (B, ACT_DIM)

    # Check vs a reference using identical bf16 quantization points
    # (tolerance loosened a bit: MXU f32 accumulation order differs from XLA).
    ref_q = actor_ref_bf16(obs, params)
    assert jnp.allclose(out, ref_q, atol=2e-3, rtol=2e-3), "mismatch vs bf16 reference"

    # Loose check vs the full-precision (PyTorch-semantics) reference.
    ref_f = actor_ref_f32(obs, params)
    assert jnp.allclose(out, ref_f, atol=1e-1), "mismatch vs f32 reference"

    print("KERNEL_OK")
</pallas_src>

<mosaic_0001>
module attributes {stable_mosaic.version = 11 : i64} {
  func.func @actor_kernel(%arg0: i32, %arg1: memref<8x16xbf16, #tpu.memory_space<vmem>>, %arg2: memref<16x512xbf16, #tpu.memory_space<vmem>>, %arg3: memref<1x512xf32, #tpu.memory_space<vmem>>, %arg4: memref<512x384xbf16, #tpu.memory_space<vmem>>, %arg5: memref<1x384xf32, #tpu.memory_space<vmem>>, %arg6: memref<384x128xbf16, #tpu.memory_space<vmem>>, %arg7: memref<3x128xf32, #tpu.memory_space<vmem>>, %arg8: memref<8x128xf32, #tpu.memory_space<vmem>>) attributes {dimension_semantics = [#tpu.dimension_semantics<parallel>], iteration_bounds = array<i64: 1>, scalar_prefetch = 0 : i64, scratch_operands = 0 : i64, tpu.core_type = #tpu.core_type<tc>, window_params = [{transform_indices = @transform_0, window_bounds = array<i64: 8, 16>}, {pipeline_mode = #tpu.pipeline_mode<synchronous>, transform_indices = @transform_1, window_bounds = array<i64: 16, 512>}, {pipeline_mode = #tpu.pipeline_mode<synchronous>, transform_indices = @transform_2, window_bounds = array<i64: 1, 512>}, {pipeline_mode = #tpu.pipeline_mode<synchronous>, transform_indices = @transform_3, window_bounds = array<i64: 512, 384>}, {pipeline_mode = #tpu.pipeline_mode<synchronous>, transform_indices = @transform_4, window_bounds = array<i64: 1, 384>}, {pipeline_mode = #tpu.pipeline_mode<synchronous>, transform_indices = @transform_5, window_bounds = array<i64: 384, 128>}, {pipeline_mode = #tpu.pipeline_mode<synchronous>, transform_indices = @transform_6, window_bounds = array<i64: 3, 128>}, {transform_indices = @transform_7, window_bounds = array<i64: 8, 128>}]} {
    %c0 = arith.constant 0 : index
    %c0_0 = arith.constant 0 : index
    %0 = vector.load %arg1[%c0, %c0_0] : memref<8x16xbf16, #tpu.memory_space<vmem>>, vector<8x16xbf16>
    %c0_1 = arith.constant 0 : index
    %c0_2 = arith.constant 0 : index
    %1 = vector.load %arg2[%c0_1, %c0_2] : memref<16x512xbf16, #tpu.memory_space<vmem>>, vector<16x512xbf16>
    %cst = arith.constant dense<0.000000e+00> : vector<8x512xf32>
    %2 = tpu.matmul %0, %1, %cst {dimension_numbers = #tpu.dot_dimension_numbers<[1], [0], [0], [1], [0, 0, 1, 1], [], []>} : vector<8x16xbf16>, vector<16x512xbf16>, vector<8x512xf32> -> vector<8x512xf32>
    %c0_3 = arith.constant 0 : index
    %c0_4 = arith.constant 0 : index
    %3 = vector.load %arg3[%c0_3, %c0_4] : memref<1x512xf32, #tpu.memory_space<vmem>>, vector<1x512xf32>
    %4 = vector.broadcast %3 : vector<1x512xf32> to vector<8x512xf32>
    %5 = arith.addf %2, %4 : vector<8x512xf32>
    %cst_5 = arith.constant 0.000000e+00 : f32
    %6 = vector.broadcast %cst_5 : f32 to vector<8x512xf32>
    %7 = arith.maximumf %5, %6 : vector<8x512xf32>
    %8 = arith.truncf %7 : vector<8x512xf32> to vector<8x512xbf16>
    %c0_6 = arith.constant 0 : index
    %c0_7 = arith.constant 0 : index
    %9 = vector.load %arg4[%c0_6, %c0_7] : memref<512x384xbf16, #tpu.memory_space<vmem>>, vector<512x384xbf16>
    %cst_8 = arith.constant dense<0.000000e+00> : vector<8x384xf32>
    %10 = tpu.matmul %8, %9, %cst_8 {dimension_numbers = #tpu.dot_dimension_numbers<[1], [0], [0], [1], [0, 0, 1, 1], [], []>} : vector<8x512xbf16>, vector<512x384xbf16>, vector<8x384xf32> -> vector<8x384xf32>
    %c0_9 = arith.constant 0 : index
    %c0_10 = arith.constant 0 : index
    %11 = vector.load %arg5[%c0_9, %c0_10] : memref<1x384xf32, #tpu.memory_space<vmem>>, vector<1x384xf32>
    %12 = vector.broadcast %11 : vector<1x384xf32> to vector<8x384xf32>
    %13 = arith.addf %10, %12 : vector<8x384xf32>
    %cst_11 = arith.constant 0.000000e+00 : f32
    %14 = vector.broadcast %cst_11 : f32 to vector<8x384xf32>
    %15 = arith.maximumf %13, %14 : vector<8x384xf32>
    %16 = arith.truncf %15 : vector<8x384xf32> to vector<8x384xbf16>
    %c0_12 = arith.constant 0 : index
    %c0_13 = arith.constant 0 : index
    %17 = vector.load %arg6[%c0_12, %c0_13] : memref<384x128xbf16, #tpu.memory_space<vmem>>, vector<384x128xbf16>
    %cst_14 = arith.constant dense<0.000000e+00> : vector<8x128xf32>
    %18 = tpu.matmul %16, %17, %cst_14 {dimension_numbers = #tpu.dot_dimension_numbers<[1], [0], [0], [1], [0, 0, 1, 1], [], []>} : vector<8x384xbf16>, vector<384x128xbf16>, vector<8x128xf32> -> vector<8x128xf32>
    %c0_15 = arith.constant 0 : index
    %c0_16 = arith.constant 0 : index
    %19 = vector.load %arg7[%c0_15, %c0_16] : memref<3x128xf32, #tpu.memory_space<vmem>>, vector<1x128xf32>
    %20 = vector.broadcast %19 : vector<1x128xf32> to vector<8x128xf32>
    %21 = arith.addf %18, %20 : vector<8x128xf32>
    %22 = math.tanh %21 : vector<8x128xf32>
    %c1 = arith.constant 1 : index
    %c0_17 = arith.constant 0 : index
    %23 = vector.load %arg7[%c1, %c0_17] : memref<3x128xf32, #tpu.memory_space<vmem>>, vector<1x128xf32>
    %24 = vector.broadcast %23 : vector<1x128xf32> to vector<8x128xf32>
    %25 = arith.mulf %22, %24 : vector<8x128xf32>
    %c2 = arith.constant 2 : index
    %c0_18 = arith.constant 0 : index
    %26 = vector.load %arg7[%c2, %c0_18] : memref<3x128xf32, #tpu.memory_space<vmem>>, vector<1x128xf32>
    %27 = vector.broadcast %26 : vector<1x128xf32> to vector<8x128xf32>
    %28 = arith.addf %25, %27 : vector<8x128xf32>
    %c0_19 = arith.constant 0 : index
    %c0_20 = arith.constant 0 : index
    %29 = vector.load %arg8[%c0_19, %c0_20] : memref<8x128xf32, #tpu.memory_space<vmem>>, vector<8x128xf32>
    tpu.vector_store %arg8[%c0_19, %c0_20], %28 {strides = array<i32>} : memref<8x128xf32, #tpu.memory_space<vmem>>, vector<8x128xf32>,
    return
  }
  func.func @transform_0(%arg0: i32) -> (i32, i32) {
    %c0_i32 = arith.constant 0 : i32
    %c0_i32_0 = arith.constant 0 : i32
    return %arg0, %c0_i32 : i32, i32
  }
  func.func @transform_1(%arg0: i32) -> (i32, i32) {
    %c0_i32 = arith.constant 0 : i32
    %c0_i32_0 = arith.constant 0 : i32
    %c0_i32_1 = arith.constant 0 : i32
    return %c0_i32, %c0_i32_0 : i32, i32
  }
  func.func @transform_2(%arg0: i32) -> (i32, i32) {
    %c0_i32 = arith.constant 0 : i32
    %c0_i32_0 = arith.constant 0 : i32
    %c0_i32_1 = arith.constant 0 : i32
    return %c0_i32, %c0_i32_0 : i32, i32
  }
  func.func @transform_3(%arg0: i32) -> (i32, i32) {
    %c0_i32 = arith.constant 0 : i32
    %c0_i32_0 = arith.constant 0 : i32
    %c0_i32_1 = arith.constant 0 : i32
    return %c0_i32, %c0_i32_0 : i32, i32
  }
  func.func @transform_4(%arg0: i32) -> (i32, i32) {
    %c0_i32 = arith.constant 0 : i32
    %c0_i32_0 = arith.constant 0 : i32
    %c0_i32_1 = arith.constant 0 : i32
    return %c0_i32, %c0_i32_0 : i32, i32
  }
  func.func @transform_5(%arg0: i32) -> (i32, i32) {
    %c0_i32 = arith.constant 0 : i32
    %c0_i32_0 = arith.constant 0 : i32
    %c0_i32_1 = arith.constant 0 : i32
    return %c0_i32, %c0_i32_0 : i32, i32
  }
  func.func @transform_6(%arg0: i32) -> (i32, i32) {
    %c0_i32 = arith.constant 0 : i32
    %c0_i32_0 = arith.constant 0 : i32
    %c0_i32_1 = arith.constant 0 : i32
    return %c0_i32, %c0_i32_0 : i32, i32
  }
  func.func @transform_7(%arg0: i32) -> (i32, i32) {
    %c0_i32 = arith.constant 0 : i32
    %c0_i32_0 = arith.constant 0 : i32
    return %arg0, %c0_i32 : i32, i32
  }
}

</mosaic_0001>

<bundles_post_ra>
// kernel: tpu_custom_call.1
= control target key start
LH: loop header
LB: loop body
LE: loop exit
PB: predicated region body
PF: predicated region fallthrough
CT: control target
= control target key end

     0   :  { %12 = vsyncpa [#allocation3], 0  ;;  %s2033_s0 = inlined_call_operand.hbm [shape: bf16[8,16], index: 0, kind: input, shape index: {}]   ;;  %s2034_s1 = inlined_call_operand.hbm [shape: bf16[16,512], index: 1, kind: input, shape index: {}]   ;;  %s2035_s2 = inlined_call_operand.vmem [shape: f32[1,512], index: 2, kind: input, shape index: {}]   ;;  %s2036_s3 = inlined_call_operand.hbm [shape: bf16[512,384], index: 3, kind: input, shape index: {}]   ;;  %s2037_s4 = inlined_call_operand.vmem [shape: f32[1,384], index: 4, kind: input, shape index: {}]   ;;  %s2038_s5 = inlined_call_operand.hbm [shape: bf16[384,128], index: 5, kind: input, shape index: {}]   ;;  %s2039_s6 = inlined_call_operand.vmem [shape: f32[3,128], index: 6, kind: input, shape index: {}]   ;;  %s2040_s7 = inlined_call_operand.hbm [shape: f32[8,128], index: 7, kind: output, shape index: {}]  }
   0x1   :  { %13 = vsyncpa [#allocation6], 0 }
   0x2   :  { %14 = vsyncpa [#allocation9], 0 }
   0x3   :  { %15 = vsyncpa [#allocation4], 0  ;;  %s1877_s24 = smov [#allocation5]   ;;  %s1759_s28 = scalar_lea.hbm %s2034_s1, 512 }
   0x4   :  { %s31_s25 = sshll.u32 %s1877_s24, 4  ;;  %p1760_p0 = scmp.ne.s32.totalorder %s2034_s1, %s1759_s28  ;;  %s32_s25 = int_to_ptr.vmem [resolvable:$true] %s31_s25 }
   0x5   :  { %p1763_p1 = scmp.lt.u32.totalorder %s1759_s28, %s2034_s1 }
   0x7   :  { %p1765_p2 = pnand %p1763_p1, %p1760_p0 }
   0x9   :  { %1768 = shalt.err (!%p1765_p2)
}
   0xa   :  { %s1769_s10 = scalar_lea.vmem %s32_s25, 512  ;;  %p1774_p4 = scmp.lt.s32.totalorder %s32_s25, %s32_s25 }
   0xb   :  { %p1770_p3 = scmp.ne.s32.totalorder %s32_s25, %s1769_s10  ;;  %p1775_p5 = scmp.lt.s32.totalorder %s1769_s10, %s1769_s10 }
   0xd   :  { %p1776_p6 = por %p1775_p5, %p1774_p4 }
   0xf   :  { %p1777_p7 = pnand %p1776_p6, %p1770_p3 }
  0x11   :  { %1780 = shalt.err (!%p1777_p7)
}
  0x12   :  { %s1878_s11 = smov 256   ;;  %s1879_s12 = smov 16  }
  0x13   :  { %37 = dma.hbm_to_vmem [thread:$0]  %s2034_s1, 512, %s32_s25, [#allocation6], %s1878_s11, %s1878_s11, %s1879_s12  }
  0x14   :  { %s1880_s15 = smov [#allocation2]   ;;  %s1881_s17 = smov [#allocation7]  }
  0x15   :  { %s22_s16 = sshll.u32 %s1880_s15, 4  ;;  %s45_s18 = sshll.u32 %s1881_s17, 4  ;;  %s23_s16 = int_to_ptr.vmem [resolvable:$true] %s22_s16  ;;  %s46_s18 = int_to_ptr.vmem [resolvable:$true] %s45_s18 }
  0x16   :  { %s1781_s21 = scalar_lea.hbm %s2033_s0, 64 }
  0x17   :  { %p1782_p8 = scmp.ne.s32.totalorder %s2033_s0, %s1781_s21  ;;  %p1785_p9 = scmp.lt.u32.totalorder %s1781_s21, %s2033_s0 }
  0x19   :  { %p1787_p10 = pnand %p1785_p9, %p1782_p8 }
  0x1b   :  { %1790 = shalt.err (!%p1787_p10)
}
  0x1c   :  { %s1791_s1 = scalar_lea.vmem %s23_s16, 64  ;;  %p1796_p12 = scmp.lt.s32.totalorder %s23_s16, %s23_s16 }
  0x1d   :  { %p1792_p11 = scmp.ne.s32.totalorder %s23_s16, %s1791_s1  ;;  %p1797_p13 = scmp.lt.s32.totalorder %s1791_s1, %s1791_s1 }
  0x1f   :  { %p1798_p0 = por %p1797_p13, %p1796_p12 }
  0x21   :  { %p1799_p1 = pnand %p1798_p0, %p1792_p11 }
  0x23   :  { %1802 = shalt.err (!%p1799_p1)
}
  0x24   :  { %25 = dma.hbm_to_vmem [thread:$0]  %s2033_s0, 64, %s23_s16, [#allocation3]  }
  0x25   :  { %s1803_s30 = scalar_lea.hbm %s2036_s3, 12288 }
  0x26   :  { %p1804_p2 = scmp.ne.s32.totalorder %s2036_s3, %s1803_s30  ;;  %p1807_p3 = scmp.lt.u32.totalorder %s1803_s30, %s2036_s3 }
  0x28   :  { %p1809_p4 = pnand %p1807_p3, %p1804_p2 }
  0x2a   :  { %1812 = shalt.err (!%p1809_p4)
}
  0x2b   :  { %s1813_s12 = scalar_lea.vmem %s46_s18, 12288  ;;  %p1818_p6 = scmp.lt.s32.totalorder %s46_s18, %s46_s18 }
  0x2c   :  { %p1814_p5 = scmp.ne.s32.totalorder %s46_s18, %s1813_s12  ;;  %p1819_p7 = scmp.lt.s32.totalorder %s1813_s12, %s1813_s12 }
  0x2e   :  { %p1820_p8 = por %p1819_p7, %p1818_p6 }
  0x30   :  { %p1821_p9 = pnand %p1820_p8, %p1814_p5 }
  0x32   :  { %1824 = shalt.err (!%p1821_p9)
}
  0x33   :  { %s1882_s0 = smov 192   ;;  %s1883_s13 = smov 12  }
  0x34   :  { %51 = dma.hbm_to_vmem [thread:$0]  %s2036_s3, 12288, %s46_s18, [#allocation6], %s1882_s0, %s1882_s0, %s1883_s13  }
  0x35   :  { %s1884_s16 = smov [#allocation8]   ;;  %s1825_s21 = scalar_lea.hbm %s2038_s5, 3072 }
  0x36   :  { %s59_s17 = sshll.u32 %s1884_s16, 4  ;;  %p1826_p10 = scmp.ne.s32.totalorder %s2038_s5, %s1825_s21  ;;  %s60_s17 = int_to_ptr.vmem [resolvable:$true] %s59_s17 }
  0x37   :  { %p1829_p11 = scmp.lt.u32.totalorder %s1825_s21, %s2038_s5 }
  0x39   :  { %p1831_p12 = pnand %p1829_p11, %p1826_p10 }
  0x3b   :  { %1834 = shalt.err (!%p1831_p12)
}
  0x3c   :  { %s1835_s1 = scalar_lea.vmem %s60_s17, 3072  ;;  %p1840_p0 = scmp.lt.s32.totalorder %s60_s17, %s60_s17 }
  0x3d   :  { %p1836_p13 = scmp.ne.s32.totalorder %s60_s17, %s1835_s1  ;;  %p1841_p1 = scmp.lt.s32.totalorder %s1835_s1, %s1835_s1 }
  0x3f   :  { %p1842_p2 = por %p1841_p1, %p1840_p0 }
  0x41   :  { %p1843_p3 = pnand %p1842_p2, %p1836_p13 }
  0x43   :  { %1846 = shalt.err (!%p1843_p3)
}
  0x44   :  { %s1885_s3 = smov 64   ;;  %s1886_s18 = smov 4  }
  0x45   :  { %65 = dma.hbm_to_vmem [thread:$0]  %s2038_s5, 3072, %s60_s17, [#allocation9], %s1885_s3, %s1885_s3, %s1886_s18  }
  0x46   :  { %1869 = dma.done.wait [#allocation3], 64  }
  0x47   :  { %1870 = vsyncadd [#allocation3], 4294967232 }
  0x48   :  { %1871 = dma.done.wait [#allocation6], 12800  }
  0x49   :  { %1872 = vsyncadd [#allocation6], 4294954496 }
  0x4a   :  { %1873 = dma.done.wait [#allocation9], 3072  }
  0x4b   :  { %1874 = vsyncadd [#allocation9], 4294964224  ;;  %v1887_v0 = vmov 0   ;;  %v1599_v1 = vld [vmem:[#allocation5 + $0x4] ss:$16 sps:$4 sm:$0xff]   ;;  %vm128_vm0 = vcmask 130048   ;;  %v88_v56 = vlaneseq }
  0x4c   :  { %164 = vmatprep.mubr.bf16.mxu0 %v1887_v0  ;;  %205 = vmatprep.mubr.bf16.mxu1 %v1887_v0  ;;  %v1601_v2 = vld [vmem:[#allocation5] ss:$16 sps:$4 sm:$0xff]   ;;  %v81_v3 = vld [vmem:[#allocation2] sm:$0xf]  ;;  %v1604_v5 = vld [vmem:[#allocation5 + $0x8] ss:$16 sps:$4 sm:$0xff]  }
  0x4d   :  { %132 = vmatprep.subr.bf16.mxu0 %v1599_v1  ;;  %v1602_v4 = vld [vmem:[#allocation5 + $0xc] ss:$16 sps:$4 sm:$0xff]   ;;  %v1607_v7 = vld [vmem:[#allocation7 + $0x4] ss:$12 sps:$4 sm:$0xff]   ;;  %v1613_v10 = vld [vmem:[#allocation7 + $0x34] ss:$12 sps:$4 sm:$0xff]  }
  0x4e   :  { %133 = vmatpush1.bf16.msra.mxu0 %v1601_v2  ;;  %v1605_v6 = vld [vmem:[#allocation7] ss:$12 sps:$4 sm:$0xff]   ;;  %173 = vmatprep.subr.bf16.mxu1 %v1602_v4  ;;  %v1610_v8 = vld [vmem:[#allocation7 + $0x1c] ss:$12 sps:$4 sm:$0xff]   ;;  %v1608_v9 = vld [vmem:[#allocation7 + $0x18] ss:$12 sps:$4 sm:$0xff]  }
  0x4f   :  { %174 = vmatpush1.bf16.msra.mxu1 %v1604_v5  ;;  %879 = vmatprep.subr.bf16.mxu0 %v1607_v7  ;;  %v1611_v11 = vld [vmem:[#allocation7 + $0x30] ss:$12 sps:$4 sm:$0xff]   ;;  %v1616_v12 = vld [vmem:[#allocation7 + $0x4c] ss:$12 sps:$4 sm:$0xff]   ;;  %v1614_v13 = vld [vmem:[#allocation7 + $0x48] ss:$12 sps:$4 sm:$0xff]  }
  0x50   :  { %v1619_v14 = vld [vmem:[#allocation7 + $0x64] ss:$12 sps:$4 sm:$0xff]   ;;  %v1632_v15 = vld [vmem:[#allocation7 + $0xc8] ss:$12 sps:$4 sm:$0xff]   ;;  %v1617_v17 = vld [vmem:[#allocation7 + $0x60] ss:$12 sps:$4 sm:$0xff]  }
  0x51   :  { %1359 = vmatmul.mubr.msk.bf16.vlgmr.msra.gmra.mrb[0].mxu0 %vm128_vm0, %v81_v3  ;;  %v1633_v16 = vld [vmem:[#allocation7 + $0x8] ss:$12 sps:$4 sm:$0xff]   ;;  %1484 = vmatprep.subr.bf16.mxu1 %v1632_v15  ;;  %v1637_v19 = vld [vmem:[#allocation7 + $0xe0] ss:$12 sps:$4 sm:$0xff]   ;;  %v1620_v21 = vld [vmem:[#allocation7 + $0x78] ss:$12 sps:$4 sm:$0xff]  }
  0x52   :  { %880 = vmatpush1.bf16.msra.mxu0 %v1605_v6  ;;  %1360 = vmatmul.mubr.msk.bf16.vlgmr.msra.gmra.mrb[0].mxu1 %vm128_vm0, %v81_v3  ;;  %v1622_v18 = vld [vmem:[#allocation7 + $0x7c] ss:$12 sps:$4 sm:$0xff]   ;;  %v1638_v20 = vld [vmem:[#allocation7 + $0x20] ss:$12 sps:$4 sm:$0xff]   ;;  %v1642_v22 = vld [vmem:[#allocation7 + $0xf8] ss:$12 sps:$4 sm:$0xff]  }
  0x53   :  { %881 = vmatprep.subr.bf16.mxu0 %v1610_v8  ;;  %1485 = vmatpush3.bf16.msra.mxu1 %v1633_v16  ;;  %v1643_v23 = vld [vmem:[#allocation7 + $0x38] ss:$12 sps:$4 sm:$0xff]   ;;  %v1625_v24 = vld [vmem:[#allocation7 + $0x94] ss:$12 sps:$4 sm:$0xff]   ;;  %v1647_v25 = vld [vmem:[#allocation7 + $0x110] ss:$12 sps:$4 sm:$0xff]  }
  0x54   :  { %1486 = vmatprep.subr.bf16.mxu1 %v1637_v19  ;;  %v1648_v26 = vld [vmem:[#allocation7 + $0x50] ss:$12 sps:$4 sm:$0xff]   ;;  %v1628_v28 = vld [vmem:[#allocation7 + $0xac] ss:$12 sps:$4 sm:$0xff]   ;;  %v1652_v29 = vld [vmem:[#allocation7 + $0x128] ss:$12 sps:$4 sm:$0xff]  }
  0x55   :  { %v1623_v27 = vld [vmem:[#allocation7 + $0x90] ss:$12 sps:$4 sm:$0xff]   ;;  %v1653_v30 = vld [vmem:[#allocation7 + $0x68] ss:$12 sps:$4 sm:$0xff]   ;;  %v1657_v33 = vld [vmem:[#allocation7 + $0x140] ss:$12 sps:$4 sm:$0xff]  }
  0x56   :  { %882 = vmatpush1.bf16.msra.mxu0 %v1608_v9  ;;  %v1626_v31 = vld [vmem:[#allocation7 + $0xa8] ss:$12 sps:$4 sm:$0xff]   ;;  %v1631_v32 = vld [vmem:[#allocation7 + $0xc4] ss:$12 sps:$4 sm:$0xff]   ;;  %v1629_v34 = vld [vmem:[#allocation7 + $0xc0] ss:$12 sps:$4 sm:$0xff]  }
  0x57   :  { %883 = vmatprep.subr.bf16.mxu0 %v1613_v10  ;;  %1487 = vmatpush3.bf16.msra.mxu1 %v1638_v20  ;;  %v1658_v35 = vld [vmem:[#allocation7 + $0x80] ss:$12 sps:$4 sm:$0xff]   ;;  %v1636_v36 = vld [vmem:[#allocation7 + $0xdc] ss:$12 sps:$4 sm:$0xff]   ;;  %v1634_v37 = vld [vmem:[#allocation7 + $0xd8] ss:$12 sps:$4 sm:$0xff]  }
  0x58   :  { %1488 = vmatprep.subr.bf16.mxu1 %v1642_v22  ;;  %v1641_v38 = vld [vmem:[#allocation7 + $0xf4] ss:$12 sps:$4 sm:$0xff]   ;;  %v1639_v39 = vld [vmem:[#allocation7 + $0xf0] ss:$12 sps:$4 sm:$0xff]   ;;  %v1646_v40 = vld [vmem:[#allocation7 + $0x10c] ss:$12 sps:$4 sm:$0xff]  }
  0x59   :  { %v1644_v41 = vld [vmem:[#allocation7 + $0x108] ss:$12 sps:$4 sm:$0xff]   ;;  %v1651_v42 = vld [vmem:[#allocation7 + $0x124] ss:$12 sps:$4 sm:$0xff]   ;;  %v1649_v43 = vld [vmem:[#allocation7 + $0x120] ss:$12 sps:$4 sm:$0xff]  }
  0x5a   :  { %884 = vmatpush1.bf16.msra.mxu0 %v1611_v11  ;;  %v1656_v44 = vld [vmem:[#allocation7 + $0x13c] ss:$12 sps:$4 sm:$0xff]   ;;  %v1654_v45 = vld [vmem:[#allocation7 + $0x138] ss:$12 sps:$4 sm:$0xff]   ;;  %v1661_v46 = vld [vmem:[#allocation7 + $0x154] ss:$12 sps:$4 sm:$0xff]  }
  0x5b   :  { %885 = vmatprep.subr.bf16.mxu0 %v1616_v12  ;;  %1489 = vmatpush3.bf16.msra.mxu1 %v1643_v23  ;;  %v1662_v47 = vld [vmem:[#allocation7 + $0x158] ss:$12 sps:$4 sm:$0xff]   ;;  %v1659_v48 = vld [vmem:[#allocation7 + $0x150] ss:$12 sps:$4 sm:$0xff]   ;;  %v1664_v52 = vld [vmem:[#allocation7 + $0x168] ss:$12 sps:$4 sm:$0xff]  }
  0x5c   :  { %1490 = vmatprep.subr.bf16.mxu1 %v1647_v25  ;;  %v1663_v49 = vld [vmem:[#allocation7 + $0x98] ss:$12 sps:$4 sm:$0xff]   ;;  %v1667_v51 = vld [vmem:[#allocation7 + $0x170] ss:$12 sps:$4 sm:$0xff]   ;;  %v1672_v55 = vld [vmem:[#allocation7 + $0x248] ss:$12 sps:$4 sm:$0xff]  }
  0x5d   :  { %v1666_v50 = vld [vmem:[#allocation7 + $0x16c] ss:$12 sps:$4 sm:$0xff]   ;;  %v1668_v53 = vld [vmem:[#allocation7 + $0xb0] ss:$12 sps:$4 sm:$0xff]   ;;  %v1979_v57 = vshrl.u32 %v88_v56, 7  ;;  %vm1889_vm1 = vmmov 0  }
  0x5e   :  { %886 = vmatpush1.bf16.msra.mxu0 %v1614_v13  ;;  %v1671_v54 = vld [vmem:[#allocation7 + $0x184] ss:$12 sps:$4 sm:$0xff]   ;;  %v1985_v59 = vld [vmem:[%s2035_s2] sm:$0xf]  ;;  %v1669_v15 = vld [vmem:[#allocation7 + $0x180] ss:$12 sps:$4 sm:$0xff]  }
  0x5f   :  { %887 = vmatprep.subr.bf16.mxu0 %v1619_v14  ;;  %1491 = vmatpush3.bf16.msra.mxu1 %v1648_v26  ;;  %v90_v58 = vsub.s32 0, %v1979_v57  ;;  %v94_v60 = vsub.s32 1, %v1979_v57  ;;  %v102_v61 = vsub.s32 3, %v1979_v57  ;;  %v1673_v16 = vld [vmem:[#allocation7 + $0x188] ss:$12 sps:$4 sm:$0xff]   ;;  %s1890_s12 = smov [#allocation10]  }
  0x60   :  { %1492 = vmatprep.subr.bf16.mxu1 %v1652_v29  ;;  %v1676_v19 = vld [vmem:[#allocation7 + $0x19c] ss:$12 sps:$4 sm:$0xff]   ;;  %v1677_v20 = vld [vmem:[#allocation7 + $0x260] ss:$12 sps:$4 sm:$0xff]   ;;  %v1674_v22 = vld [vmem:[#allocation7 + $0x198] ss:$12 sps:$4 sm:$0xff]  }
  0x61   :  { %v91_v62 = vrot.slane %v1985_v59, %v90_v58  ;;  %v95_v63 = vrot.slane %v1985_v59, %v94_v60  ;;  %v103_v1 = vrot.slane %v1985_v59, %v102_v61  ;;  %v1678_v23 = vld [vmem:[#allocation7 + $0x1a0] ss:$12 sps:$4 sm:$0xff]   ;;  %v1682_v25 = vld [vmem:[#allocation7 + $0x278] ss:$12 sps:$4 sm:$0xff]   ;;  %v1679_v26 = vld [vmem:[#allocation7 + $0x1b0] ss:$12 sps:$4 sm:$0xff]  }
  0x62   :  { %888 = vmatpush1.bf16.msra.mxu0 %v1617_v17  ;;  %v1687_v29 = vld [vmem:[#allocation7 + $0x290] ss:$12 sps:$4 sm:$0xff]   ;;  %v1712_v56 = vld [vmem:[#allocation7 + $0x258] ss:$12 sps:$4 sm:$0xff]   ;;  %s1344_s0 = sshll.u32 %s1890_s12, 4  ;;  %s1345_s0 = int_to_ptr.vmem [resolvable:$true] %s1344_s0 }
  0x63   :  { %889 = vmatprep.subr.bf16.mxu0 %v1622_v18  ;;  %1493 = vmatpush3.bf16.msra.mxu1 %v1653_v30  ;;  %v1684_v30 = vld [vmem:[#allocation7 + $0x1c8] ss:$12 sps:$4 sm:$0xff]   ;;  %v1715_v61 = vld [vmem:[#allocation7 + $0x270] ss:$12 sps:$4 sm:$0xff]   ;;  %s1847_s13 = scalar_lea.vmem %s1345_s0, 128  ;;  %p1852_p5 = scmp.lt.s32.totalorder %s1345_s0, %s1345_s0 }
  0x64   :  { %1494 = vmatprep.subr.bf16.mxu1 %v1657_v33  ;;  %v1692_v33 = vld [vmem:[#allocation7 + $0x2a8] ss:$12 sps:$4 sm:$0xff]   ;;  %p1848_p4 = scmp.ne.s32.totalorder %s1345_s0, %s1847_s13  ;;  %p1853_p6 = scmp.lt.s32.totalorder %s1847_s13, %s1847_s13 }
  0x66   :  { %890 = vmatpush1.bf16.msra.mxu0 %v1620_v21  ;;  %p1854_p7 = por %p1853_p6, %p1852_p5 }
  0x67   :  { %891 = vmatprep.subr.bf16.mxu0 %v1625_v24  ;;  %1495 = vmatpush3.bf16.msra.mxu1 %v1658_v35  ;;  %v1681_v24 = vld [vmem:[#allocation7 + $0x1b4] ss:$12 sps:$4 sm:$0xff]  }
  0x68   :  { %1496 = vmatprep.subr.bf16.mxu1 %v1662_v47  ;;  %v1689_v35 = vld [vmem:[#allocation7 + $0x1e0] ss:$12 sps:$4 sm:$0xff]   ;;  %p1855_p8 = pnand %p1854_p7, %p1848_p4 }
  0x69   :  { %v1706_v47 = vld [vmem:[#allocation7 + $0x22c] ss:$12 sps:$4 sm:$0xff]  }
  0x6a   :  { %892 = vmatpush1.bf16.msra.mxu0 %v1623_v27  ;;  %v1683_v27 = vld [vmem:[#allocation7 + $0x1b8] ss:$12 sps:$4 sm:$0xff]  }
  0x6b   :  { %893 = vmatprep.subr.bf16.mxu0 %v1628_v28  ;;  %1497 = vmatpush3.bf16.msra.mxu1 %v1663_v49  ;;  %v1686_v28 = vld [vmem:[#allocation7 + $0x1cc] ss:$12 sps:$4 sm:$0xff]  }
  0x6c   :  { %1498 = vmatprep.subr.bf16.mxu1 %v1667_v51  ;;  %v1708_v51 = vld [vmem:[#allocation7 + $0x230] ss:$12 sps:$4 sm:$0xff]  }
  0x6e   :  { %894 = vmatpush1.bf16.msra.mxu0 %v1626_v31  ;;  %v1688_v31 = vld [vmem:[#allocation7 + $0x1d0] ss:$12 sps:$4 sm:$0xff]  }
  0x6f   :  { %895 = vmatprep.subr.bf16.mxu0 %v1631_v32  ;;  %1499 = vmatpush3.bf16.msra.mxu1 %v1668_v53  ;;  %v1691_v32 = vld [vmem:[#allocation7 + $0x1e4] ss:$12 sps:$4 sm:$0xff]  }
  0x70   :  { %1506 = vmatprep.subr.bf16.mxu1 %v1672_v55  ;;  %v1714_v55 = vld [vmem:[#allocation7 + $0x25c] ss:$12 sps:$4 sm:$0xff]  }
  0x72   :  { %896 = vmatpush1.bf16.msra.mxu0 %v1629_v34  ;;  %v98_v34 = vsub.s32 2, %v1979_v57  ;;  %v1751_v57 = vld [vmem:[#allocation8 + $0x90] sm:$0xff]  }
  0x73   :  { %897 = vmatprep.subr.bf16.mxu0 %v1636_v36  ;;  %v1693_v36 = vld [vmem:[#allocation7 + $0x1e8] ss:$12 sps:$4 sm:$0xff]  }
  0x76   :  { %898 = vmatpush1.bf16.msra.mxu0 %v1634_v37  ;;  %v1696_v37 = vld [vmem:[#allocation7 + $0x1fc] ss:$12 sps:$4 sm:$0xff]  }
  0x77   :  { %899 = vmatprep.subr.bf16.mxu0 %v1641_v38  ;;  %v1697_v38 = vld [vmem:[#allocation7 + $0x2c0] ss:$12 sps:$4 sm:$0xff]  }
  0x7a   :  { %900 = vmatpush1.bf16.msra.mxu0 %v1639_v39  ;;  %v99_v39 = vrot.slane %v1985_v59, %v98_v34  ;;  %v1717_v59 = vld [vmem:[#allocation7 + $0x274] ss:$12 sps:$4 sm:$0xff]  }
  0x7b   :  { %901 = vmatprep.subr.bf16.mxu0 %v1646_v40  ;;  %v1694_v40 = vld [vmem:[#allocation7 + $0x1f8] ss:$12 sps:$4 sm:$0xff]  }
  0x7e   :  { %902 = vmatpush1.bf16.msra.mxu0 %v1644_v41  ;;  %v1698_v41 = vld [vmem:[#allocation7 + $0x200] ss:$12 sps:$4 sm:$0xff]  }
  0x7f   :  { %903 = vmatprep.subr.bf16.mxu0 %v1651_v42  ;;  %v1701_v42 = vld [vmem:[#allocation7 + $0x214] ss:$12 sps:$4 sm:$0xff]  }
  0x82   :  { %904 = vmatpush1.bf16.msra.mxu0 %v1649_v43  ;;  %v1702_v43 = vld [vmem:[#allocation7 + $0x2d8] ss:$12 sps:$4 sm:$0xff]  }
  0x83   :  { %905 = vmatprep.subr.bf16.mxu0 %v1656_v44 }
  0x86   :  { %906 = vmatpush1.bf16.msra.mxu0 %v1654_v45  ;;  %v1699_v45 = vld [vmem:[#allocation7 + $0x210] ss:$12 sps:$4 sm:$0xff]  }
  0x87   :  { %907 = vmatprep.subr.bf16.mxu0 %v1661_v46  ;;  %v1703_v46 = vld [vmem:[#allocation7 + $0x218] ss:$12 sps:$4 sm:$0xff]  }
  0x8a   :  { %908 = vmatpush1.bf16.msra.mxu0 %v1659_v48  ;;  %v1707_v48 = vld [vmem:[#allocation7 + $0x2f0] ss:$12 sps:$4 sm:$0xff]  }
  0x8b   :  { %909 = vmatprep.subr.bf16.mxu0 %v1666_v50  ;;  %v1704_v50 = vld [vmem:[#allocation7 + $0x228] ss:$12 sps:$4 sm:$0xff]  }
  0x8e   :  { %910 = vmatpush1.bf16.msra.mxu0 %v1664_v52  ;;  %v1711_v52 = vld [vmem:[#allocation7 + $0x244] ss:$12 sps:$4 sm:$0xff]  }
  0x8f   :  { %920 = vmatprep.subr.bf16.mxu0 %v1671_v54  ;;  %v1709_v54 = vld [vmem:[#allocation7 + $0x240] ss:$12 sps:$4 sm:$0xff]  }
 0x124   :  { %v166_v0 = vpop.f32.mrb[0].mxu0 }
 0x125   :  { %v167_v2 = vadd.f32 %v166_v0, %v91_v62  ;;  %v168_v3 = vpop.f32.mrb[1].mxu0  ;;  %v1996_v6 = vpop.f32.mrb[0].mxu1  ;;  %v1720_v62 = vld [vmem:[#allocation7 + $0x28c] ss:$12 sps:$4 sm:$0xff]   ;;  %v1723_v0 = vld [vmem:[#allocation7 + $0x2a4] ss:$12 sps:$4 sm:$0xff]  }
 0x126   :  { %v169_v4 = vadd.f32 %v168_v3, %v95_v63  ;;  %v170_v5 = vpop.f32.mrb[2].mxu0  ;;  %v209_v9 = vpop.f32.mrb[1].mxu1  ;;  %v208_v44 = vadd.f32 %v1996_v6, %v99_v39  ;;  %v1718_v63 = vld [vmem:[#allocation7 + $0x288] ss:$12 sps:$4 sm:$0xff]   ;;  %v1724_v3 = vld [vmem:[#allocation7 + $0x2b8] ss:$12 sps:$4 sm:$0xff]  }
 0x127   :  { %v214_v7 = vmax.f32 %v167_v2, 0.0  ;;  %v171_v8 = vpop.f32.mrb[3].mxu0  ;;  %v210_v11 = vadd.f32 %v209_v9, %v103_v1  ;;  %v211_v12 = vpop.f32.mrb[2].mxu1  ;;  %v1721_v1 = vld [vmem:[#allocation7 + $0x2a0] ss:$12 sps:$4 sm:$0xff]  }
 0x128   :  { %v215_v10 = vmax.f32 %v169_v4, 0.0  ;;  %v212_v13 = vpop.f32.mrb[3].mxu1  ;;  %v216_v49 = vmax.f32 %v208_v44, 0.0  ;;  %v1726_v2 = vld [vmem:[#allocation7 + $0x2bc] ss:$12 sps:$4 sm:$0xff]   ;;  %v1733_v8 = vld [vmem:[#allocation8 + $0x40] sm:$0xff]  }
 0x129   :  { %v217_v17 = vmax.f32 %v210_v11, 0.0  ;;  %v218_v18 = vpack.c.bf16 %v214_v7, %v214_v7  ;;  %v1729_v4 = vld [vmem:[#allocation7 + $0x2d4] ss:$12 sps:$4 sm:$0xff]   ;;  %v1727_v5 = vld [vmem:[#allocation7 + $0x2d0] ss:$12 sps:$4 sm:$0xff]   ;;  %v1736_v11 = vld [vmem:[#allocation8 + $0x8] sm:$0xff]  }
 0x12a   :  { %v219_v14 = vpack.c.bf16 %v215_v10, %v215_v10  ;;  %v220_v53 = vpack.c.bf16 %v216_v49, %v216_v49  ;;  %v1732_v6 = vld [vmem:[#allocation7 + $0x2ec] ss:$12 sps:$4 sm:$0xff]   ;;  %v1730_v7 = vld [vmem:[#allocation7 + $0x2e8] ss:$12 sps:$4 sm:$0xff]   ;;  %v1734_v9 = vld [vmem:[#allocation8] sm:$0xff]  }
 0x12b   :  { %v221_v21 = vpack.c.bf16 %v217_v17, %v217_v17  ;;  %v1735_v10 = vld [vmem:[#allocation8 + $0x48] sm:$0xff]   ;;  %v1737_v12 = vld [vmem:[#allocation8 + $0x50] sm:$0xff]   ;;  %v1742_v17 = vld [vmem:[#allocation8 + $0x20] sm:$0xff]  }
 0x12c   :  { %911 = vmatprep.mubr.bf16.mxu0 %v219_v14  ;;  %993 = vmatprep.mubr.bf16.mxu1 %v219_v14  ;;  %v1738_v13 = vld [vmem:[#allocation8 + $0x10] sm:$0xff]   ;;  %v1739_v14 = vld [vmem:[#allocation8 + $0x58] sm:$0xff]  }
 0x12d   :  { %912 = vmatmul.mubr.bf16.vlgmr.msra.gmra.mrb[4].mxu0 %v218_v18  ;;  %994 = vmatmul.mubr.bf16.vlgmr.msra.gmra.mrb[4].mxu1 %v218_v18  ;;  %v1743_v18 = vld [vmem:[#allocation8 + $0x68] sm:$0xff]  }
 0x12e   :  { %921 = vmatpush1.bf16.msra.mxu0 %v1669_v15  ;;  %1507 = vmatpush3.bf16.msra.mxu1 %v1673_v16  ;;  %v1740_v15 = vld [vmem:[#allocation8 + $0x18] sm:$0xff]   ;;  %v1741_v16 = vld [vmem:[#allocation8 + $0x60] sm:$0xff]  }
 0x12f   :  { %922 = vmatprep.subr.bf16.mxu0 %v1676_v19  ;;  %1508 = vmatprep.subr.bf16.mxu1 %v1677_v20  ;;  %v1744_v19 = vld [vmem:[#allocation8 + $0x28] sm:$0xff]   ;;  %v1745_v20 = vld [vmem:[#allocation8 + $0x70] sm:$0xff]  }
 0x130   :  { %1033 = vmatprep.mubr.bf16.mxu1 %v221_v21  ;;  %952 = vmatprep.mubr.bf16.mxu0 %v221_v21  ;;  %v1746_v21 = vld [vmem:[#allocation8 + $0x30] sm:$0xff]  }
 0x132   :  { %923 = vmatpush1.bf16.msra.mxu0 %v1674_v22  ;;  %1509 = vmatpush3.bf16.msra.mxu1 %v1678_v23  ;;  %v1747_v22 = vld [vmem:[#allocation8 + $0x78] sm:$0xff]  }
 0x133   :  { %924 = vmatprep.subr.bf16.mxu0 %v1681_v24  ;;  %1510 = vmatprep.subr.bf16.mxu1 %v1682_v25  ;;  %v1748_v23 = vld [vmem:[#allocation8 + $0x38] sm:$0xff]   ;;  %v1888_v24 = vmov 0.0  }
 0x136   :  { %925 = vmatpush1.bf16.msra.mxu0 %v1679_v26  ;;  %1511 = vmatpush3.bf16.msra.mxu1 %v1683_v27 }
 0x137   :  { %926 = vmatprep.subr.bf16.mxu0 %v1686_v28  ;;  %1512 = vmatprep.subr.bf16.mxu1 %v1687_v29 }
 0x13a   :  { %927 = vmatpush1.bf16.msra.mxu0 %v1684_v30  ;;  %1513 = vmatpush3.bf16.msra.mxu1 %v1688_v31  ;;  %v350_v30 = vld [vmem:[%s2037_s4] sm:$0x7] }
 0x13b   :  { %928 = vmatprep.subr.bf16.mxu0 %v1691_v32  ;;  %1514 = vmatprep.subr.bf16.mxu1 %v1692_v33  ;;  %v363_v31 = vrot.slane %v350_v30, %v98_v34 }
 0x13e   :  { %929 = vmatpush1.bf16.msra.mxu0 %v1689_v35  ;;  %1515 = vmatpush3.bf16.msra.mxu1 %v1693_v36 }
 0x13f   :  { %930 = vmatprep.subr.bf16.mxu0 %v1696_v37  ;;  %1516 = vmatprep.subr.bf16.mxu1 %v1697_v38 }
 0x142   :  { %931 = vmatpush1.bf16.msra.mxu0 %v1694_v40  ;;  %1517 = vmatpush3.bf16.msra.mxu1 %v1698_v41  ;;  %v355_v40 = vrot.slane %v350_v30, %v90_v58  ;;  %v359_v41 = vrot.slane %v350_v30, %v94_v60  ;;  %v1752_v58 = vld [vmem:[#allocation8 + $0x98] sm:$0xff]   ;;  %v1753_v60 = vld [vmem:[#allocation8 + $0xa0] sm:$0xff]  }
 0x143   :  { %932 = vmatprep.subr.bf16.mxu0 %v1701_v42  ;;  %1518 = vmatprep.subr.bf16.mxu1 %v1702_v43 }
 0x146   :  { %933 = vmatpush1.bf16.msra.mxu0 %v1699_v45  ;;  %1519 = vmatpush3.bf16.msra.mxu1 %v1703_v46 }
 0x147   :  { %934 = vmatprep.subr.bf16.mxu0 %v1706_v47  ;;  %1520 = vmatprep.subr.bf16.mxu1 %v1707_v48 }
 0x14a   :  { %935 = vmatpush1.bf16.msra.mxu0 %v1704_v50  ;;  %1521 = vmatpush3.bf16.msra.mxu1 %v1708_v51  ;;  %v1749_v50 = vld [vmem:[#allocation8 + $0x80] sm:$0xff]  }
 0x14b   :  { %936 = vmatprep.subr.bf16.mxu0 %v1711_v52  ;;  %1528 = vmatprep.subr.bf16.mxu1 %v1733_v8  ;;  %v1750_v52 = vld [vmem:[#allocation8 + $0x88] sm:$0xff]  }
 0x14d   :  { %1034 = vmatmul.mubr.bf16.vlgmr.msra.gmra.mrb[8].mxu1 %v220_v53 }
 0x14e   :  { %937 = vmatpush1.bf16.msra.mxu0 %v1709_v54  ;;  %1529 = vmatpush3.bf16.msra.mxu1 %v1734_v9  ;;  %v1755_v54 = vld [vmem:[#allocation8 + $0xb0] sm:$0xff]   ;;  %v1482_v9 = vld [vmem:[%s2039_s6 + $0x1] ss:$0 sm:$0xff] }
 0x14f   :  { %938 = vmatprep.subr.bf16.mxu0 %v1714_v55  ;;  %1530 = vmatprep.subr.bf16.mxu1 %v1735_v10  ;;  %v1756_v55 = vld [vmem:[#allocation8 + $0xb8] sm:$0xff]  }
 0x152   :  { %939 = vmatpush1.bf16.msra.mxu0 %v1712_v56  ;;  %1531 = vmatpush3.bf16.msra.mxu1 %v1736_v11  ;;  %v1483_v11 = vld [vmem:[%s2039_s6 + $0x2] ss:$0 sm:$0xff] }
 0x153   :  { %940 = vmatprep.subr.bf16.mxu0 %v1717_v59  ;;  %1532 = vmatprep.subr.bf16.mxu1 %v1737_v12 }
 0x156   :  { %941 = vmatpush1.bf16.msra.mxu0 %v1715_v61  ;;  %1533 = vmatpush3.bf16.msra.mxu1 %v1738_v13 }
 0x157   :  { %942 = vmatprep.subr.bf16.mxu0 %v1720_v62  ;;  %1534 = vmatprep.subr.bf16.mxu1 %v1739_v14 }
 0x15a   :  { %943 = vmatpush1.bf16.msra.mxu0 %v1718_v63  ;;  %1535 = vmatpush3.bf16.msra.mxu1 %v1740_v15 }
 0x15b   :  { %944 = vmatprep.subr.bf16.mxu0 %v1723_v0  ;;  %1536 = vmatprep.subr.bf16.mxu1 %v1741_v16 }
 0x15e   :  { %945 = vmatpush1.bf16.msra.mxu0 %v1721_v1  ;;  %1537 = vmatpush3.bf16.msra.mxu1 %v1742_v17 }
 0x15f   :  { %946 = vmatprep.subr.bf16.mxu0 %v1726_v2  ;;  %1538 = vmatprep.subr.bf16.mxu1 %v1743_v18  ;;  %v1457_v2 = vld [vmem:[%s2039_s6] ss:$0 sm:$0xff] }
 0x162   :  { %947 = vmatpush1.bf16.msra.mxu0 %v1724_v3  ;;  %1539 = vmatpush3.bf16.msra.mxu1 %v1744_v19 }
 0x163   :  { %948 = vmatprep.subr.bf16.mxu0 %v1729_v4  ;;  %1540 = vmatprep.subr.bf16.mxu1 %v1745_v20 }
 0x166   :  { %949 = vmatpush1.bf16.msra.mxu0 %v1727_v5  ;;  %1541 = vmatpush3.bf16.msra.mxu1 %v1746_v21 }
 0x167   :  { %950 = vmatprep.subr.bf16.mxu0 %v1732_v6  ;;  %1542 = vmatprep.subr.bf16.mxu1 %v1747_v22 }
 0x16a   :  { %951 = vmatpush1.bf16.msra.mxu0 %v1730_v7  ;;  %1543 = vmatpush3.bf16.msra.mxu1 %v1748_v23 }
 0x16b   :  { %1559 = vmatprep.subr.bf16.mxu1 %v1888_v24 }
 0x16d   :  { %953 = vmatmul.mubr.bf16.vlgmr.msra.gmra.mrb[4].mxu0 %v220_v53  ;;  %v1754_v53 = vld [vmem:[#allocation8 + $0xa8] sm:$0xff]  }
 0x200   :  { %v1500_v25 = vpop.f32.mrb[4].mxu1 }
 0x201   :  { %v1501_v26 = vpop.f32.mrb[5].mxu1 }
 0x202   :  { %v1502_v27 = vadd.f32 %v1501_v26, %v1500_v25  ;;  %v1503_v28 = vpop.f32.mrb[6].mxu1 }
 0x203   :  { %v1504_v29 = vpop.f32.mrb[7].mxu1 }
 0x204   :  { %v996_v35 = vadd.f32 %v1502_v27, %v363_v31 }
 0x220   :  { %v1522_v32 = vpop.f32.mrb[8].mxu1 }
 0x221   :  { %v1523_v33 = vpop.f32.mrb[9].mxu1 }
 0x222   :  { %v1524_v36 = vadd.f32 %v1523_v33, %v1522_v32  ;;  %v1525_v37 = vpop.f32.mrb[10].mxu1 }
 0x223   :  { %v1526_v38 = vpop.f32.mrb[11].mxu1 }
 0x224   :  { %v1036_v39 = vadd.f32 %v1524_v36, %v996_v35 }
 0x226   :  { %v1043_v56 = vmax.f32 %v1036_v39, 0.0 }
 0x228   :  { %v1046_v59 = vpack.c.bf16 %v1043_v56, %v1043_v56 }
 0x240   :  { %v954_v42 = vpop.f32.mrb[4].mxu0 }
 0x241   :  { %v1579_v43 = vadd.f32 %v954_v42, %v355_v40  ;;  %v956_v44 = vpop.f32.mrb[5].mxu0 }
 0x242   :  { %v1580_v45 = vadd.f32 %v956_v44, %v359_v41  ;;  %v958_v46 = vpop.f32.mrb[6].mxu0 }
 0x243   :  { %v1041_v47 = vmax.f32 %v1579_v43, 0.0  ;;  %v959_v34 = vpop.f32.mrb[7].mxu0 }
 0x244   :  { %v1042_v48 = vmax.f32 %v1580_v45, 0.0 }
 0x245   :  { %v1044_v51 = vpack.c.bf16 %v1041_v47, %v1041_v47 }
 0x246   :  { %v1045_v49 = vpack.c.bf16 %v1042_v48, %v1042_v48 }
 0x248   :  { %1276 = vmatprep.mubr.bf16.mxu1 %v1045_v49 }
 0x249   :  { %1277 = vmatmul.mubr.bf16.vlgmr.msra.gmra.mrb[12].mxu1 %v1044_v51 }
 0x24a   :  { %1560 = vmatpush3.bf16.msra.mxu1 %v1749_v50  ;;  %1575 = vmatprep.mubr.msk.bf16.mxu1 %vm1889_vm1, %v1888_v24 }
 0x24b   :  { %1561 = vmatprep.subr.bf16.mxu1 %v1888_v24 }
 0x24e   :  { %1562 = vmatpush3.bf16.msra.mxu1 %v1750_v52 }
 0x24f   :  { %1563 = vmatprep.subr.bf16.mxu1 %v1888_v24 }
 0x252   :  { %1564 = vmatpush3.bf16.msra.mxu1 %v1751_v57 }
 0x253   :  { %1565 = vmatprep.subr.bf16.mxu1 %v1888_v24 }
 0x256   :  { %1566 = vmatpush3.bf16.msra.mxu1 %v1752_v58 }
 0x257   :  { %1567 = vmatprep.subr.bf16.mxu1 %v1888_v24 }
 0x25a   :  { %1568 = vmatpush3.bf16.msra.mxu1 %v1753_v60 }
 0x25b   :  { %1569 = vmatprep.subr.bf16.mxu1 %v1888_v24 }
 0x25e   :  { %1570 = vmatpush3.bf16.msra.mxu1 %v1754_v53 }
 0x25f   :  { %1571 = vmatprep.subr.bf16.mxu1 %v1888_v24 }
 0x262   :  { %1572 = vmatpush3.bf16.msra.mxu1 %v1755_v54 }
 0x263   :  { %1573 = vmatprep.subr.bf16.mxu1 %v1888_v24 }
 0x266   :  { %1574 = vmatpush3.bf16.msra.mxu1 %v1756_v55 }
 0x269   :  { %1576 = vmatmul.mubr.bf16.vlgmr.msra.gmra.mrb[16].mxu1 %v1046_v59 }
 0x31c   :  { %v1544_v61 = vpop.f32.mrb[12].mxu1 }
 0x31d   :  { %v1545_v62 = vpop.f32.mrb[13].mxu1 }
 0x31e   :  { %v1546_v63 = vadd.f32 %v1545_v62, %v1544_v61  ;;  %v1547_v0 = vpop.f32.mrb[14].mxu1 }
 0x31f   :  { %v1548_v1 = vpop.f32.mrb[15].mxu1 }
 0x320   :  { %v1279_v3 = vadd.f32 %v1546_v63, %v1457_v2 }
 0x33c   :  { %v1318_v4 = vpop.f32.mrb[16].mxu1 }
 0x33d   :  { %v1319_v5 = vadd.f32 %v1318_v4, %v1279_v3  ;;  %v1577_v6 = vpop.f32.mrb[17].mxu1 }
 0x33e   :  { %v1321_v7 = vpop.f32.mrb[18].mxu1 }
 0x33f   :  { %1757 = vtanh.f32 %v1319_v5  ;;  %v1578_v8 = vpop.f32.mrb[19].mxu1 }
 0x349   :  { %v1758_v10 = vpop.eup %1757 }
 0x34a   :  { %v1330_v12 = vmul.f32 %v1758_v10, %v1482_v9 }
 0x34c   :  { %v1336_v13 = vadd.f32 %v1483_v11, %v1330_v12 }
 0x34e   :  { %1337 = vst [vmem:[#allocation10] sm:$0xff] %v1336_v13 }
 0x34f   :  { %1858 = shalt.err (!%p1855_p8)
}
 0x350   :  { %s1859_s16 = scalar_lea.hbm %s2040_s7, 128 }
 0x351   :  { %p1860_p9 = scmp.ne.s32.totalorder %s2040_s7, %s1859_s16  ;;  %p1863_p10 = scmp.lt.u32.totalorder %s1859_s16, %s2040_s7 }
 0x353   :  { %p1865_p11 = pnand %p1863_p10, %p1860_p9 }
 0x355   :  { %1868 = shalt.err (!%p1865_p11)
}
 0x356   :  { %1347 = dma.vmem_to_hbm [thread:$0]  %s1345_s0, 128, %s2040_s7, [#allocation4]  }
 0x357   :  { %1875 = dma.done.wait [#allocation4], 128  }
 0x358   :  { %1876 = vsyncadd [#allocation4], 4294967168 }
 0x359   :  { %1351 = vsyncpa [#allocation3], 1 }
 0x35a   :  { %1352 = vsyncpa [#allocation6], 1 }
 0x35b   :  { %1353 = vsyncpa [#allocation9], 1 }
 0x35c   :  { %1354 = vsyncpa [#allocation4], 1 }

</bundles_post_ra>
